<compile_context>
chip_gen: v5e
topology: v5e:2x2
jax: 0.10.0
libtpu: 0.0.40
codegen_flags: <defaults>
</compile_context>

<pallas_src>
import functools

import jax
import jax.numpy as jnp
from jax.experimental import pallas as pl
from jax.experimental.pallas import tpu as pltpu


def _round_up(x: int, m: int) -> int:
    return ((x + m - 1) // m) * m


def _cdiv(a: int, b: int) -> int:
    return (a + b - 1) // b


# Buffer budget for kernel tiles (double-buffered); leaves headroom under the
# 48 MiB scoped-VMEM limit requested below (OK on v5e/v6e 128 MiB and v7x 64 MiB).
_VMEM_BUFFER_BUDGET = 26 * 1024 * 1024
_VMEM_LIMIT_BYTES = 48 * 1024 * 1024


def _linear_resident_kernel(x_ref, w_ref, b_ref, o_ref):
    # x_ref: (tm, K)   w_ref: (K, N) resident   b_ref: (1, N)   o_ref: (tm, N)
    acc = jnp.dot(x_ref[...], w_ref[...], preferred_element_type=jnp.float32)
    o_ref[...] = (acc + b_ref[...].astype(jnp.float32)).astype(o_ref.dtype)


def _linear_tiled_kernel(x_ref, w_ref, b_ref, o_ref, acc_ref):
    # x_ref: (tm, tk)  w_ref: (tk, tn) [K, N layout]  b_ref: (1, tn)
    # o_ref: (tm, tn)  acc_ref: (tm, tn) f32 scratch
    k = pl.program_id(2)

    @pl.when(k == 0)
    def _():
        # Initialize the accumulator with the broadcast bias (saves the
        # finalize-path add).
        acc_ref[...] = jnp.broadcast_to(b_ref[...].astype(jnp.float32), acc_ref.shape)

    acc_ref[...] += jnp.dot(x_ref[...], w_ref[...], preferred_element_type=jnp.float32)

    @pl.when(k == pl.num_programs(2) - 1)
    def _():
        o_ref[...] = acc_ref[...].astype(o_ref.dtype)


@functools.partial(jax.jit, static_argnames=("tm", "tn", "tk"))
def snnet_forward(x, weight, bias, *, tm: int = 1024, tn: int = None, tk: int = None):
    """x: (B, S, in_dim); weight: (out_dim, in_dim) [PyTorch layout]; bias: (out_dim,)."""
    B, S, Din = x.shape
    Dout, Din_w = weight.shape
    assert Din_w == Din
    M = B * S
    itemsize = jnp.dtype(x.dtype).itemsize

    x2d = x.reshape(M, Din)
    w_kn = weight.T              # single cheap wrapper transpose -> (K, N) MXU layout
    b2d = bias.reshape(1, Dout)

    # --- resident-W footprint estimate ((8,128)-tiled layout, double-buffered) ---
    k_lanes = _round_up(Din, 128)
    n_lanes = _round_up(Dout, 128)
    w_bytes = 2 * _round_up(Din, 8) * n_lanes * itemsize
    b_bytes = 2 * 8 * n_lanes * itemsize
    per_row = 2 * (k_lanes + n_lanes) * itemsize          # x-tile + out-tile per M row

    force_tiled = (tn is not None) or (tk is not None)
    fits_resident = (w_bytes + b_bytes + 8 * per_row) <= _VMEM_BUFFER_BUDGET

    if not force_tiled and fits_resident:
        # ---------------- resident-W path (the common SNNet case) ----------------
        tm_budget = (_VMEM_BUFFER_BUDGET - w_bytes - b_bytes) // per_row
        tm_budget = max(8, (tm_budget // 8) * 8)
        tm_r = max(8, min(_round_up(tm, 8), _round_up(M, 8), tm_budget))
        # v7x megacore: keep >= 2 parallel M steps when there is enough work.
        if _cdiv(M, tm_r) == 1 and M >= 16:
            tm_r = min(tm_r, _round_up(_cdiv(M, 2), 8))

        grid = (_cdiv(M, tm_r),)
        out = pl.pallas_call(
            _linear_resident_kernel,
            out_shape=jax.ShapeDtypeStruct((M, Dout), x.dtype),
            grid_spec=pltpu.PrefetchScalarGridSpec(
                num_scalar_prefetch=0,
                grid=grid,
                in_specs=[
                    pl.BlockSpec((tm_r, Din), lambda i: (i, 0)),   # x: M-tiled
                    pl.BlockSpec((Din, Dout), lambda i: (0, 0)),   # W: resident
                    pl.BlockSpec((1, Dout), lambda i: (0, 0)),     # bias: resident
                ],
                out_specs=pl.BlockSpec((tm_r, Dout), lambda i: (i, 0)),
            ),
            compiler_params=pltpu.CompilerParams(
                dimension_semantics=("parallel",),
                vmem_limit_bytes=_VMEM_LIMIT_BYTES,
            ),
            cost_estimate=pl.CostEstimate(
                flops=2 * M * Din * Dout,
                transcendentals=0,
                bytes_accessed=itemsize * (M * Din + Din * Dout + Dout + M * Dout),
            ),
        )(x2d, w_kn, b2d)
        return out.reshape(B, S, Dout)

    # ------------- tiled (M, N, K) fallback (huge W or forced tiles) -------------
    tn_t = _round_up(tn if tn is not None else 512, 128)
    tk_t = _round_up(tk if tk is not None else 512, 128)
    tm_t = max(8, _round_up(min(tm, _round_up(M, 8)), 8))

    K_pad = _round_up(Din, tk_t)
    x_t, w_t = x2d, w_kn
    if K_pad != Din:
        # K must be explicitly zero-padded: garbage along the contraction dim
        # would corrupt real outputs (M/N edge blocks only feed dropped writes).
        x_t = jnp.pad(x2d, ((0, 0), (0, K_pad - Din)))
        w_t = jnp.pad(w_kn, ((0, K_pad - Din), (0, 0)))

    grid = (_cdiv(M, tm_t), _cdiv(Dout, tn_t), K_pad // tk_t)
    num_m, num_n = grid[0], grid[1]

    out = pl.pallas_call(
        _linear_tiled_kernel,
        out_shape=jax.ShapeDtypeStruct((M, Dout), x.dtype),
        grid_spec=pltpu.PrefetchScalarGridSpec(
            num_scalar_prefetch=0,
            grid=grid,
            in_specs=[
                pl.BlockSpec((tm_t, tk_t), lambda i, j, k: (i, k)),   # x tile
                pl.BlockSpec((tk_t, tn_t), lambda i, j, k: (k, j)),   # W tile (K, N)
                pl.BlockSpec((1, tn_t), lambda i, j, k: (0, j)),      # bias tile
            ],
            out_specs=pl.BlockSpec((tm_t, tn_t), lambda i, j, k: (i, j)),
            scratch_shapes=[pltpu.VMEM((tm_t, tn_t), jnp.float32)],
        ),
        compiler_params=pltpu.CompilerParams(
            dimension_semantics=("parallel", "parallel", "arbitrary"),
            vmem_limit_bytes=_VMEM_LIMIT_BYTES,
        ),
        cost_estimate=pl.CostEstimate(
            flops=2 * M * K_pad * Dout,
            transcendentals=0,
            bytes_accessed=itemsize * (M * K_pad * num_n + K_pad * Dout * num_m
                                       + Dout * num_m + M * Dout),
        ),
    )(x_t, w_t, b2d)
    return out.reshape(B, S, Dout)


if __name__ == "__main__":
    # TODO(synk): initialize_stitching_weights (least-squares ps_inv over anchor
    # block features) is offline parameter setup, not part of the forward pass.

    key = jax.random.PRNGKey(0)

    # --- Test 1: small shape implied by the module (resident-W path, 2 M-steps) ---
    B, S, IN_DIM, OUT_DIM = 2, 8, 32, 32
    k1, k2, k3, key = jax.random.split(key, 4)
    x = jax.random.normal(k1, (B, S, IN_DIM), dtype=jnp.float32)
    weight = jax.random.normal(k2, (OUT_DIM, IN_DIM), dtype=jnp.float32) * 0.05
    bias = jax.random.normal(k3, (OUT_DIM,), dtype=jnp.float32) * 0.05

    y = snnet_forward(x, weight, bias)
    jax.block_until_ready(y)
    y_ref = jnp.einsum("bsi,oi->bso", x, weight) + bias
    assert y.shape == (B, S, OUT_DIM)
    assert jnp.allclose(y, y_ref, atol=1e-4, rtol=1e-4)

    # --- Test 2: force the tiled fallback (real (M, N, K) grid with K-accumulation,
    #     bias-initialized accumulator, N-indexed bias tiles); grid = (3, 2, 3) ---
    B2, S2, IN2, OUT2 = 2, 24, 384, 256
    k4, k5, k6, key = jax.random.split(key, 4)
    x2 = jax.random.normal(k4, (B2, S2, IN2), dtype=jnp.float32)
    w2 = jax.random.normal(k5, (OUT2, IN2), dtype=jnp.float32) * 0.05
    b2 = jax.random.normal(k6, (OUT2,), dtype=jnp.float32) * 0.05

    y2 = snnet_forward(x2, w2, b2, tm=16, tn=128, tk=128)
    jax.block_until_ready(y2)
    y2_ref = jnp.einsum("bsi,oi->bso", x2, w2) + b2
    assert y2.shape == (B2, S2, OUT2)
    assert jnp.allclose(y2, y2_ref, atol=1e-4, rtol=1e-4)

    # --- Test 3: non-(8,128)-aligned dims -> exercises masked edge blocks
    #     (no wrapper-side M padding and no output slicing) ---
    B3, S3, IN3, OUT3 = 3, 5, 40, 24
    k7, k8, k9, key = jax.random.split(key, 4)
    x3 = jax.random.normal(k7, (B3, S3, IN3), dtype=jnp.float32)
    w3 = jax.random.normal(k8, (OUT3, IN3), dtype=jnp.float32) * 0.05
    b3 = jax.random.normal(k9, (OUT3,), dtype=jnp.float32) * 0.05

    y3 = snnet_forward(x3, w3, b3)
    jax.block_until_ready(y3)
    y3_ref = jnp.einsum("bsi,oi->bso", x3, w3) + b3
    assert y3.shape == (B3, S3, OUT3)
    assert jnp.allclose(y3, y3_ref, atol=1e-4, rtol=1e-4)

    print("KERNEL_OK")
</pallas_src>

<mosaic_0001>
module attributes {stable_mosaic.version = 11 : i64} {
  func.func @_linear_resident_kernel(%arg0: i32, %arg1: memref<8x32xf32, #tpu.memory_space<vmem>>, %arg2: memref<32x32xf32, #tpu.memory_space<vmem>>, %arg3: memref<1x32xf32, #tpu.memory_space<vmem>>, %arg4: memref<8x32xf32, #tpu.memory_space<vmem>>) attributes {dimension_semantics = [#tpu.dimension_semantics<parallel>], iteration_bounds = array<i64: 2>, scalar_prefetch = 0 : i64, scratch_operands = 0 : i64, tpu.core_type = #tpu.core_type<tc>, window_params = [{transform_indices = @transform_0, window_bounds = array<i64: 8, 32>}, {pipeline_mode = #tpu.pipeline_mode<synchronous>, transform_indices = @transform_1, window_bounds = array<i64: 32, 32>}, {pipeline_mode = #tpu.pipeline_mode<synchronous>, transform_indices = @transform_2, window_bounds = array<i64: 1, 32>}, {transform_indices = @transform_3, window_bounds = array<i64: 8, 32>}]} {
    %c0 = arith.constant 0 : index
    %c0_0 = arith.constant 0 : index
    %0 = vector.load %arg1[%c0, %c0_0] : memref<8x32xf32, #tpu.memory_space<vmem>>, vector<8x32xf32>
    %c0_1 = arith.constant 0 : index
    %c0_2 = arith.constant 0 : index
    %1 = vector.load %arg2[%c0_1, %c0_2] : memref<32x32xf32, #tpu.memory_space<vmem>>, vector<32x32xf32>
    %cst = arith.constant dense<0.000000e+00> : vector<8x32xf32>
    %2 = tpu.matmul %0, %1, %cst {dimension_numbers = #tpu.dot_dimension_numbers<[1], [0], [0], [1], [0, 0, 1, 1], [], []>} : vector<8x32xf32>, vector<32x32xf32>, vector<8x32xf32> -> vector<8x32xf32>
    %c0_3 = arith.constant 0 : index
    %c0_4 = arith.constant 0 : index
    %3 = vector.load %arg3[%c0_3, %c0_4] : memref<1x32xf32, #tpu.memory_space<vmem>>, vector<1x32xf32>
    %4 = vector.broadcast %3 : vector<1x32xf32> to vector<8x32xf32>
    %5 = arith.addf %2, %4 : vector<8x32xf32>
    %c0_5 = arith.constant 0 : index
    %c0_6 = arith.constant 0 : index
    %6 = vector.load %arg4[%c0_5, %c0_6] : memref<8x32xf32, #tpu.memory_space<vmem>>, vector<8x32xf32>
    tpu.vector_store %arg4[%c0_5, %c0_6], %5 {strides = array<i32>} : memref<8x32xf32, #tpu.memory_space<vmem>>, vector<8x32xf32>,
    return
  }
  func.func @transform_0(%arg0: i32) -> (i32, i32) {
    %c0_i32 = arith.constant 0 : i32
    %c0_i32_0 = arith.constant 0 : i32
    return %arg0, %c0_i32 : i32, i32
  }
  func.func @transform_1(%arg0: i32) -> (i32, i32) {
    %c0_i32 = arith.constant 0 : i32
    %c0_i32_0 = arith.constant 0 : i32
    %c0_i32_1 = arith.constant 0 : i32
    return %c0_i32, %c0_i32_0 : i32, i32
  }
  func.func @transform_2(%arg0: i32) -> (i32, i32) {
    %c0_i32 = arith.constant 0 : i32
    %c0_i32_0 = arith.constant 0 : i32
    %c0_i32_1 = arith.constant 0 : i32
    return %c0_i32, %c0_i32_0 : i32, i32
  }
  func.func @transform_3(%arg0: i32) -> (i32, i32) {
    %c0_i32 = arith.constant 0 : i32
    %c0_i32_0 = arith.constant 0 : i32
    return %arg0, %c0_i32 : i32, i32
  }
}

</mosaic_0001>

<bundles_post_ra>
// kernel: snnet_forward.1
= control target key start
LH: loop header
LB: loop body
LE: loop exit
PB: predicated region body
PF: predicated region fallthrough
CT: control target
= control target key end

     0   :  { %8 = vsyncpa [#allocation3], 0  ;;  %s512_s0 = inlined_call_operand.vmem [shape: f32[16,32], index: 0, kind: input, shape index: {}]   ;;  %s513_s1 = inlined_call_operand.vmem [shape: f32[32,32], index: 1, kind: input, shape index: {}]   ;;  %s514_s2 = inlined_call_operand.vmem [shape: f32[1,32], index: 2, kind: input, shape index: {}]   ;;  %s515_s3 = inlined_call_operand.hbm [shape: f32[16,32], index: 3, kind: output, shape index: {}]  }
   0x1   :  { %10 = vsyncpa [#allocation3 + $0x1], 0  ;;  %s410_s12 = smov 0   ;;  %s412_s13 = smov 0  }
   0x2   :  { %s414_s14 = smov 0   ;;  %s416_s15 = smov 0  }
   0x3 LB: > { %s431_s16 = sadd.s32 4294967295, %s388_s15   ;;  %s275_s17 = sadd.s32 4294967294, %s388_s15   ;;  %s388_s15 = sphi %s416_s15, %s521_s15   ;;  %s384_s14 = sphi %s414_s14, %s520_s14   ;;  %s380_s13 = sphi %s412_s13, %s519_s13   ;;  %s376_s12 = sphi %s410_s12, %s518_s12  }
   0x4   : > { %s435_s18 = sadd.s32 1, %s388_s15   ;;  %s91_s19 = sadd.s32 1, %s384_s14 }
   0x5   : > { %s88_s20 = ssub.s32 %s388_s15, %s435_s18  ;;  %p101_p0 = scmp.ne.s32.totalorder %s384_s14, %s380_s13 }
   0x6   : > { %p89_p1 = scmp.eq.s32.totalorder %s88_s20, 0  ;;  %p102_p2 = scmp.eq.s32.totalorder %s431_s16, 1 }
   0x7   : > { %p107_p3 = scmp.ne.s32.totalorder %s380_s13, %s376_s12  ;;  %p108_p4 = scmp.eq.s32.totalorder %s275_s17, 1 }
   0x8   : > { %s446_s21 = scalar_select %p89_p1, %s384_s14, %s91_s19  }
   0x9   : > { %p448_p5 = por %p102_p2, %p101_p0  ;;  %p452_p6 = por %p108_p4, %p107_p3 }
   0xa   : > { %p278_p7 = scmp.ge.s32.totalorder %s388_s15, 1  ;;  %p139_p8 = scmp.lt.s32.totalorder %s388_s15, 3 }
   0xc   : > { %p140_p9 = pnand %p278_p7, %p139_p8 }
   0xd   : > { %p162_p10 = scmp.lt.s32.totalorder (!%p140_p9), %s431_s16, 1  ;;  %s159_s10 = sand.u32 (!%p140_p9), 1, %s380_s13  }
   0xe   : > { %143 = sbr.rel (%p140_p9) target bundleno = 158 (0x9e), region = 32  ;;  %s279_s11 = sshll.u32 (!%p140_p9), %s159_s10, 3 }
   0xf   : > { %s283_s17 = sshll.u32 (!%p140_p9), %s431_s16, 3  ;;  %s161_s27 = scalar_lea.vmem (!%p140_p9), [#allocation2], %s279_s11 }
  0x10   : > { %s211_s24 = scalar_lea.hbm (!%p140_p9), %s515_s3, %s283_s17  ;;  %s213_s28 = sshll.u32 (!%p140_p9), %s161_s27, 4  ;;  %s214_s28 = int_to_ptr.vmem [resolvable:$true] %s213_s28 }
  0x11   : > { %s215_s29 = sshll.u32 (!%p140_p9), %s211_s24, 4  ;;  %s346_s7 = scalar_lea.hbm (!%p140_p9), %s515_s3, 16  ;;  %s216_s29 = int_to_ptr.hbm [resolvable:$true] %s215_s29 }
  0x13   : > { %v170_v0 = vld [vmem:[%s513_s1 + $0x18] sm:$0xff]  ;;  %v169_v1 = vld [vmem:[%s513_s1 + $0x10] sm:$0xff]  ;;  %v168_v2 = vld [vmem:[%s513_s1 + $0x8] sm:$0xff]  ;;  %s163_s30 = scalar_select %p162_p10, %s431_s16, 1  ;;  %vm175_vm0 = vcmask 261120  }
  0x14   : > { %191 = vmatpush.msra.mxu0 %v170_v0  ;;  %v167_v3 = vld [vmem:[%s513_s1] sm:$0xff]  ;;  %s340_s16 = sshra.s32 %s216_s29, 4  ;;  %s341_s16 = int_to_ptr.hbm [resolvable:$true] %s340_s16 }
  0x15   : > { %s280_s6 = sshll.u32 %s163_s30, 3  ;;  %v325_v5 = vld [vmem:[%s514_s2] ss:$0 sm:$0xff]  ;;  %s201_s30 = scalar_lea.sflag [#allocation3], %s159_s10 }
  0x16   : > { %192 = vmatpush.msra.mxu0 %v169_v1  ;;  %s165_s9 = scalar_lea.vmem %s512_s0, %s280_s6  ;;  %s342_s4 = scalar_lea.hbm %s341_s16, 8 }
  0x17   : > { %v166_v4 = vld [vmem:[%s165_s9] sm:$0xff]  ;;  %p343_p11 = scmp.ne.s32.totalorder %s341_s16, %s342_s4  ;;  %p347_p0 = scmp.lt.s32.totalorder %s341_s16, %s515_s3 }
  0x18   : > { %193 = vmatpush.msra.mxu0 %v168_v2  ;;  %p348_p1 = scmp.lt.s32.totalorder %s346_s7, %s342_s4 }
  0x19   : > { %p344_p12 = pnand %p343_p11, %p448_p5 }
  0x1a   : > { %194 = vmatpush.msra.mxu0 %v167_v3  ;;  %p349_p2 = por %p348_p1, %p347_p0 }
  0x1b   : > { %281 = vmatmul.msk.f32.vlgmr.msra.gmra.mxu0 %vm175_vm0, %v166_v4  ;;  %p345_p13 = pneg %p344_p12 }
  0x1d   : > { %p350_p3 = pnand %p349_p2, %p345_p13 }
  0x98   : > { %v196_v6 = vpop.f32.mrf.mxu0 }
  0x99   : > { %v197_v7 = vadd.f32 %v325_v5, %v196_v6 }
  0x9b   : > { %199 = vst.msk [vmem:[%s161_s27] sm:$0xff] %vm175_vm0, %v197_v7 }
  0x9c   : > { %353 = shalt.err (!%p350_p3)
}
  0x9d   : > { %286 = dma.vmem_to_hbm [thread:$0]  (%p448_p5), %s214_s28, 128, %s216_s29, %s201_s30  }
  0x9e PF: > { %p292_p4 = scmp.ge.s32.totalorder %s388_s15, 2  ;;  %s227_s10 = sand.u32 1, %s376_s12  }
  0x9f   : > { %s228_s11 = scalar_lea.sflag [#allocation3], %s227_s10 }
  0xa0   : > { %p289_p7 = pnand %p292_p4, %p452_p6 }
  0xa2   : > { %p290_p8 = pneg %p289_p7 }
  0xa4   : > { %371 = dma.done.wait (%p290_p8), %s228_s11, 128  }
  0xa5   : > { %373 = vsyncadd (%p290_p8), %s228_s11, 4294967168  ;;  %p13_p9 = scmp.ge.s32.totalorder %s435_s18, 4   ;;  %s518_s12 = smov %s380_s13 }
  0xa6   : > { %s519_s13 = smov %s384_s14  ;;  %s520_s14 = smov %s446_s21 }
  0xa7   : > { %s521_s15 = smov %s435_s18  ;;  %15 = sbr.rel (!%p13_p9) target bundleno = 3 (0x3), region = 67 }
  0xac   :  { %234 = vsyncpa [#allocation3], 1 }
  0xad   :  { %236 = vsyncpa [#allocation3 + $0x1], 1 }

</bundles_post_ra>
